<compile_context>
chip_gen: v7x
topology: tpu7x:2x2x1
jax: 0.10.0
libtpu: 0.0.40
codegen_flags: <defaults>
</compile_context>

<pallas_src>
import functools
import math

import jax
import jax.numpy as jnp
from jax.experimental import pallas as pl
from jax.experimental.pallas import tpu as pltpu


def _round_up(a, b):
    return (a + b - 1) // b * b


def _pad2d(a, rows, cols):
    return jnp.pad(a, ((0, rows - a.shape[0]), (0, cols - a.shape[1])))


# ---------------------------------------------------------------------------
# XW = x @ Wa precompute (one shot per conv; depends only on the k axis, so it
# must not be recomputed per row tile inside the main grid).
# ---------------------------------------------------------------------------
def _xw_kernel(x_ref, w_ref, o_ref):
    o_ref[...] = jnp.dot(
        x_ref[...], w_ref[...], preferred_element_type=jnp.float32
    ).astype(o_ref.dtype)


def _precompute_xw(x, w, *, tr):
    np_, c = x.shape
    hp = w.shape[1]
    return pl.pallas_call(
        _xw_kernel,
        out_shape=jax.ShapeDtypeStruct((np_, hp), jnp.bfloat16),
        grid_spec=pltpu.PrefetchScalarGridSpec(
            num_scalar_prefetch=0,
            grid=(np_ // tr,),
            in_specs=[
                pl.BlockSpec((tr, c), lambda i: (i, 0)),   # feature row tile
                pl.BlockSpec((c, hp), lambda i: (0, 0)),   # W_a (resident)
            ],
            out_specs=pl.BlockSpec((tr, hp), lambda i: (i, 0)),
        ),
        compiler_params=pltpu.CompilerParams(dimension_semantics=("parallel",)),
    )(x, w)


# ---------------------------------------------------------------------------
# One GINConv: acc = M @ XW (bf16 x bf16 -> f32), then MLP tail + store.
# ---------------------------------------------------------------------------
def _gin_layer_kernel(out_relu, m_ref, xw_ref, ba_ref, wb_ref, bb_ref,
                      o_ref, acc_ref):
    k = pl.program_id(1)

    @pl.when(k == 0)
    def _():
        acc_ref[...] = jnp.zeros_like(acc_ref)

    # Dominant O(N^2) matmul: native bf16 operands, f32 accumulation on MXU.
    acc_ref[...] += jnp.dot(m_ref[...], xw_ref[...],
                            preferred_element_type=jnp.float32)

    @pl.when(k == pl.num_programs(1) - 1)
    def _():
        h = jnp.maximum(acc_ref[...] + ba_ref[...], 0.0)   # ReLU inside the MLP
        y = jnp.dot(h, wb_ref[...],
                    preferred_element_type=jnp.float32) + bb_ref[...]
        if out_relu:                                        # F.relu between convs
            y = jnp.maximum(y, 0.0)
        o_ref[...] = y.astype(o_ref.dtype)


def _gin_layer(m, xw, ba, wb, bb, *, out_relu, out_dtype, tm, tk):
    np_ = m.shape[0]
    hp = xw.shape[1]
    op = wb.shape[1]
    grid = (np_ // tm, np_ // tk)
    kernel = functools.partial(_gin_layer_kernel, out_relu)
    return pl.pallas_call(
        kernel,
        out_shape=jax.ShapeDtypeStruct((np_, op), out_dtype),
        grid_spec=pltpu.PrefetchScalarGridSpec(
            num_scalar_prefetch=0,
            grid=grid,
            in_specs=[
                pl.BlockSpec((tm, tk), lambda i, k: (i, k)),   # M tile (bf16)
                pl.BlockSpec((tk, hp), lambda i, k: (k, 0)),   # XW k-tile (bf16)
                pl.BlockSpec((1, hp), lambda i, k: (0, 0)),    # b_a (resident)
                pl.BlockSpec((hp, op), lambda i, k: (0, 0)),   # W_b (resident)
                pl.BlockSpec((1, op), lambda i, k: (0, 0)),    # b_b (resident)
            ],
            out_specs=pl.BlockSpec((tm, op), lambda i, k: (i, 0)),
            scratch_shapes=[pltpu.VMEM((tm, hp), jnp.float32)],
        ),
        compiler_params=pltpu.CompilerParams(
            dimension_semantics=("parallel", "arbitrary")),
    )(m, xw, ba, wb, bb)


def gin_forward(x, edge_index, params, *, tm=512, tk=1024):
    """x: (N, in_channels) f32; edge_index: (2, E) int32 (row0=src, row1=dst)."""
    n, cin = x.shape
    hidden = params["w1a"].shape[1]
    cout = params["w2b"].shape[1]

    lane = 128
    cin_p = _round_up(cin, 8)            # sublane-align the tiny input channel dim
    hp = _round_up(hidden, lane)         # lane-dense hidden
    op = _round_up(cout, lane)           # lane-dense output

    # Clamp tiles so small graphs don't pay quadratic padding up to huge tiles,
    # then pad N so it divides both tile sizes.
    n128 = _round_up(max(n, 1), lane)
    tm = min(tm, n128)
    tk = min(tk, n128)
    np_ = _round_up(max(n, 1), math.lcm(tm, tk))

    # Glue: dense M = A + (1 + eps) * I, eps = 0, built directly in bf16 with
    # the diagonal folded into the scatter (no eye / dense add / recast passes).
    # Multi-edge counts stay exact in bf16 up to 256.
    diag = jnp.arange(n, dtype=edge_index.dtype)
    dst = jnp.concatenate([edge_index[1], diag])
    src = jnp.concatenate([edge_index[0], diag])
    m = jnp.zeros((np_, np_), jnp.bfloat16).at[dst, src].add(
        jnp.ones_like(dst, dtype=jnp.bfloat16))

    x_p = _pad2d(x.astype(jnp.float32), np_, cin_p)

    w1a = _pad2d(params["w1a"], cin_p, hp)
    b1a = _pad2d(params["b1a"], 1, hp)
    w1b = _pad2d(params["w1b"], hp, hp)
    b1b = _pad2d(params["b1b"], 1, hp)
    w2a = _pad2d(params["w2a"], hp, hp)
    b2a = _pad2d(params["b2a"], 1, hp)
    w2b = _pad2d(params["w2b"], hp, op)
    b2b = _pad2d(params["b2b"], 1, op)

    # conv1 (+ inter-conv ReLU): hoisted XW1, bf16 intermediate h1.
    xw1 = _precompute_xw(x_p, w1a, tr=tm)                               # (Np, 128) bf16
    h1 = _gin_layer(m, xw1, b1a, w1b, b1b, out_relu=True,
                    out_dtype=jnp.bfloat16, tm=tm, tk=tk)               # (Np, 128) bf16
    # conv2: hoisted XW2 from bf16 h1, f32 output.
    xw2 = _precompute_xw(h1, w2a, tr=tm)                                # (Np, 128) bf16
    y = _gin_layer(m, xw2, b2a, w2b, b2b, out_relu=False,
                   out_dtype=jnp.float32, tm=tm, tk=tk)
    return y[:n, :cout]


def make_params(key, in_channels, hidden_channels, out_channels):
    ks = jax.random.split(key, 8)

    def lin(kw, kb, fan_in, fan_out):
        bound = 1.0 / jnp.sqrt(fan_in)
        w = jax.random.uniform(kw, (fan_in, fan_out), jnp.float32, -bound, bound)
        b = jax.random.uniform(kb, (1, fan_out), jnp.float32, -bound, bound)
        return w, b

    w1a, b1a = lin(ks[0], ks[1], in_channels, hidden_channels)
    w1b, b1b = lin(ks[2], ks[3], hidden_channels, hidden_channels)
    w2a, b2a = lin(ks[4], ks[5], hidden_channels, hidden_channels)
    w2b, b2b = lin(ks[6], ks[7], hidden_channels, out_channels)
    return dict(w1a=w1a, b1a=b1a, w1b=w1b, b1b=b1b,
                w2a=w2a, b2a=b2a, w2b=w2b, b2b=b2b)


def gin_reference(x, edge_index, params):
    """Pure-JAX f32 (HIGHEST precision) reference of the same forward."""
    n = x.shape[0]
    src, dst = edge_index[0], edge_index[1]
    a = jnp.zeros((n, n), jnp.float32).at[dst, src].add(1.0)
    m = a + jnp.eye(n, dtype=jnp.float32)
    hi = jax.lax.Precision.HIGHEST

    h = jnp.dot(m, x, precision=hi)
    h = jnp.maximum(jnp.dot(h, params["w1a"], precision=hi) + params["b1a"], 0.0)
    h = jnp.dot(h, params["w1b"], precision=hi) + params["b1b"]
    h = jnp.maximum(h, 0.0)
    h = jnp.dot(m, h, precision=hi)
    h = jnp.maximum(jnp.dot(h, params["w2a"], precision=hi) + params["b2a"], 0.0)
    h = jnp.dot(h, params["w2b"], precision=hi) + params["b2b"]
    return h


if __name__ == "__main__":
    key = jax.random.PRNGKey(0)
    k_x, k_e, k_p = jax.random.split(key, 3)

    N, E = 200, 800
    in_channels, hidden_channels, out_channels = 4, 32, 16

    x = jax.random.normal(k_x, (N, in_channels), jnp.float32)
    edge_index = jax.random.randint(k_e, (2, E), 0, N, jnp.int32)
    params = make_params(k_p, in_channels, hidden_channels, out_channels)

    ref = gin_reference(x, edge_index, params)

    # Small tiles -> multi-step grid along both axes (exercises the k-accumulator).
    out_small = jax.block_until_ready(
        gin_forward(x, edge_index, params, tm=128, tk=128))
    # Default (production-ish) tiles; clamped internally for this small graph.
    out_big = jax.block_until_ready(gin_forward(x, edge_index, params))

    assert out_small.shape == (N, out_channels)
    assert out_big.shape == (N, out_channels)
    # Kernel uses bf16 MXU operands (same rounding points as default-precision
    # f32 matmuls on TPU); compare against the HIGHEST-precision reference with
    # a tolerance that covers bf16 operand rounding.
    assert jnp.allclose(out_small, ref, atol=5e-3, rtol=5e-3), \
        float(jnp.max(jnp.abs(out_small - ref)))
    assert jnp.allclose(out_big, ref, atol=5e-3, rtol=5e-3), \
        float(jnp.max(jnp.abs(out_big - ref)))

    print("KERNEL_OK")
</pallas_src>

<mosaic_0001>
module attributes {stable_mosaic.version = 11 : i64} {
  func.func @_xw_kernel(%arg0: i32, %arg1: memref<128x8xf32, #tpu.memory_space<vmem>>, %arg2: memref<8x128xf32, #tpu.memory_space<vmem>>, %arg3: memref<128x128xbf16, #tpu.memory_space<vmem>>) attributes {dimension_semantics = [#tpu.dimension_semantics<parallel>], iteration_bounds = array<i64: 2>, scalar_prefetch = 0 : i64, scratch_operands = 0 : i64, tpu.core_type = #tpu.core_type<tc>, window_params = [{transform_indices = @transform_0, window_bounds = array<i64: 128, 8>}, {pipeline_mode = #tpu.pipeline_mode<synchronous>, transform_indices = @transform_1, window_bounds = array<i64: 8, 128>}, {transform_indices = @transform_2, window_bounds = array<i64: 128, 128>}]} {
    %c0 = arith.constant 0 : index
    %c0_0 = arith.constant 0 : index
    %0 = vector.load %arg1[%c0, %c0_0] : memref<128x8xf32, #tpu.memory_space<vmem>>, vector<128x8xf32>
    %c0_1 = arith.constant 0 : index
    %c0_2 = arith.constant 0 : index
    %1 = vector.load %arg2[%c0_1, %c0_2] : memref<8x128xf32, #tpu.memory_space<vmem>>, vector<8x128xf32>
    %cst = arith.constant dense<0.000000e+00> : vector<128x128xf32>
    %2 = tpu.matmul %0, %1, %cst {dimension_numbers = #tpu.dot_dimension_numbers<[1], [0], [0], [1], [0, 0, 1, 1], [], []>} : vector<128x8xf32>, vector<8x128xf32>, vector<128x128xf32> -> vector<128x128xf32>
    %3 = arith.truncf %2 : vector<128x128xf32> to vector<128x128xbf16>
    %c0_3 = arith.constant 0 : index
    %c0_4 = arith.constant 0 : index
    %4 = vector.load %arg3[%c0_3, %c0_4] : memref<128x128xbf16, #tpu.memory_space<vmem>>, vector<128x128xbf16>
    tpu.vector_store %arg3[%c0_3, %c0_4], %3 {strides = array<i32>} : memref<128x128xbf16, #tpu.memory_space<vmem>>, vector<128x128xbf16>,
    return
  }
  func.func @transform_0(%arg0: i32) -> (i32, i32) {
    %c0_i32 = arith.constant 0 : i32
    %c0_i32_0 = arith.constant 0 : i32
    return %arg0, %c0_i32 : i32, i32
  }
  func.func @transform_1(%arg0: i32) -> (i32, i32) {
    %c0_i32 = arith.constant 0 : i32
    %c0_i32_0 = arith.constant 0 : i32
    %c0_i32_1 = arith.constant 0 : i32
    return %c0_i32, %c0_i32_0 : i32, i32
  }
  func.func @transform_2(%arg0: i32) -> (i32, i32) {
    %c0_i32 = arith.constant 0 : i32
    %c0_i32_0 = arith.constant 0 : i32
    return %arg0, %c0_i32 : i32, i32
  }
}

</mosaic_0001>

<bundles_post_ra>
// kernel: tpu_custom_call.1
= control target key start
LH: loop header
LB: loop body
LE: loop exit
PB: predicated region body
PF: predicated region fallthrough
CT: control target
= control target key end

     0   :  { %7 = vsyncpa [#allocation3], 0  ;;  %s913_s0 = inlined_call_operand.vmem [shape: f32[256,8], index: 0, kind: input, shape index: {}]   ;;  %s914_s1 = inlined_call_operand.vmem [shape: f32[8,128], index: 1, kind: input, shape index: {}]   ;;  %s915_s2 = inlined_call_operand.hbm [shape: bf16[256,128], index: 2, kind: output, shape index: {}]  }
   0x1   :  { %9 = vsyncpa [#allocation3 + $0x1], 0  ;;  %s788_s9 = smov 0   ;;  %s790_s10 = smov 0  }
   0x2   :  { %s792_s11 = smov 0   ;;  %s794_s12 = smov 0  }
   0x3 LB: > { %s809_s13 = sadd.s32 4294967295, %s768_s12   ;;  %s512_s14 = sadd.s32 4294967294, %s768_s12   ;;  %s768_s12 = sphi %s794_s12, %s921_s12   ;;  %s764_s11 = sphi %s792_s11, %s920_s11   ;;  %s760_s10 = sphi %s790_s10, %s919_s10   ;;  %s756_s9 = sphi %s788_s9, %s918_s9  }
   0x4   : > { %s813_s15 = sadd.s32 1, %s768_s12   ;;  %s69_s16 = sadd.s32 1, %s764_s11 }
   0x5   : > { %s66_s17 = ssub.s32 %s768_s12, %s813_s15  ;;  %p79_p0 = scmp.ne.s32.totalorder %s764_s11, %s760_s10 }
   0x6   : > { %p67_p1 = scmp.eq.s32.totalorder %s66_s17, 0  ;;  %p80_p2 = scmp.eq.s32.totalorder %s809_s13, 1 }
   0x7   : > { %p85_p3 = scmp.ne.s32.totalorder %s760_s10, %s756_s9  ;;  %p86_p4 = scmp.eq.s32.totalorder %s512_s14, 1 }
   0x8   : > { %s824_s18 = scalar_select %p67_p1, %s764_s11, %s69_s16  }
   0x9   : > { %p826_p5 = por %p80_p2, %p79_p0  ;;  %p830_p6 = por %p86_p4, %p85_p3 }
   0xa   : > { %p515_p7 = scmp.ge.s32.totalorder %s768_s12, 1  ;;  %p116_p8 = scmp.lt.s32.totalorder %s768_s12, 3 }
   0xc   : > { %p117_p9 = pnand %p515_p7, %p116_p8 }
   0xd   : > { %v161_v0 = vld [vmem:[%s914_s1] sm:$0xff] (!%p117_p9)  ;;  %s517_s23 = sshll.u32 (!%p117_p9), %s809_s13, 4  ;;  %vm162_vm0 = vcmask (!%p117_p9), 64512   ;;  %s135_s28 = sand.u32 (!%p117_p9), 1, %s760_s10  }
   0xe   : > { %120 = sbr.rel (%p117_p9) target bundleno = 269 (0x10d), region = 28  ;;  %637 = vmatprep.subr.mxu0 (!%p117_p9), %v161_v0  ;;  %663 = vmatprep.subr.mxu1 (!%p117_p9), %v161_v0  ;;  %p139_p10 = scmp.lt.s32.totalorder (!%p117_p9), %s517_s23, 31 }
   0xf   : > { %638 = vmatpush3.msra.mxu0 (!%p117_p9), %v161_v0  ;;  %664 = vmatpush3.msra.mxu1 (!%p117_p9), %v161_v0  ;;  %s516_s29 = sshll.u32 (!%p117_p9), %s135_s28, 6  ;;  %s572_s3 = sshll.u32 (!%p117_p9), %s809_s13, 10 }
  0x10   : > { %s137_s30 = scalar_lea.vmem (!%p117_p9), [#allocation2], %s516_s29  ;;  %s866_s7 = scalar_lea.hbm (!%p117_p9), %s915_s2, %s572_s3 }
  0x11   : > { %s450_s4 = sshll.u32 (!%p117_p9), %s137_s30, 4  ;;  %s872_s8 = scalar_lea.sflag (!%p117_p9), [#allocation3], %s135_s28  ;;  %s868_s4 = int_to_ptr.vmem [resolvable:$true] %s450_s4 }
  0x12   : > { %s706_s13 = scalar_lea.vmem (!%p117_p9), %s868_s4, 1024  ;;  %s770_s14 = smov (!%p117_p9), [#allocation2]  }
  0x13   : > { %p707_p11 = scmp.ne.s32.totalorder (!%p117_p9), %s868_s4, %s706_s13  ;;  %s710_s16 = sshll.u32 (!%p117_p9), %s770_s14, 4  ;;  %s711_s16 = int_to_ptr.vmem [resolvable:$false] %s710_s16 }
  0x14   : > { %s712_s17 = scalar_lea.vmem (!%p117_p9), %s711_s16, 2048  ;;  %p713_p0 = scmp.lt.s32.totalorder (!%p117_p9), %s868_s4, %s711_s16 }
  0x15   : > { %s923_s23 = smov (!%p139_p10, %s517_s23), 31  ;;  %p708_p12 = pnand %p707_p11, %p826_p5 }
  0x16   : > { %s518_s24 = sshll.u32 %s923_s23, 3  ;;  %p714_p1 = scmp.lt.s32.totalorder %s712_s17, %s706_s13 }
  0x17   : > { %s142_s27 = scalar_lea.vmem %s913_s0, %s518_s24  ;;  %p709_p13 = pneg %p708_p12 }
  0x18   : > { %v145_v1 = vld [vmem:[%s142_s27] sm:$0xff]  ;;  %v146_v3 = vld [vmem:[%s142_s27 + $0x8] sm:$0xff]  ;;  %v147_v5 = vld [vmem:[%s142_s27 + $0x10] sm:$0xff]  ;;  %p715_p2 = por %p714_p1, %p713_p0 }
  0x19   : > { %v153_v2 = vld [vmem:[%s142_s27 + $0x40] sm:$0xff]  ;;  %639 = vmatprep.mubr.msk.f32.mxu0 %vm162_vm0, %v145_v1  ;;  %v154_v4 = vld [vmem:[%s142_s27 + $0x48] sm:$0xff]  ;;  %v155_v6 = vld [vmem:[%s142_s27 + $0x50] sm:$0xff] }
  0x1a   : > { %651 = vmatprep.mubr.msk.f32.mxu1 %vm162_vm0, %v153_v2  ;;  %640 = vmatmul.mubr.msk.f32.vlgmr.msra.gmra.mrb[0].mxu0 %vm162_vm0, %v146_v3  ;;  %v148_v7 = vld [vmem:[%s142_s27 + $0x18] sm:$0xff]  ;;  %v149_v9 = vld [vmem:[%s142_s27 + $0x20] sm:$0xff]  ;;  %v150_v11 = vld [vmem:[%s142_s27 + $0x28] sm:$0xff]  ;;  %p716_p3 = pnand %p715_p2, %p709_p13 }
  0x1b   : > { %652 = vmatmul.mubr.msk.f32.vlgmr.msra.gmra.mrb[0].mxu1 %vm162_vm0, %v154_v4  ;;  %642 = vmatprep.mubr.msk.f32.mxu0 %vm162_vm0, %v147_v5  ;;  %v156_v8 = vld [vmem:[%s142_s27 + $0x58] sm:$0xff]  ;;  %v157_v10 = vld [vmem:[%s142_s27 + $0x60] sm:$0xff]  ;;  %v158_v12 = vld [vmem:[%s142_s27 + $0x68] sm:$0xff] }
  0x1c   : > { %654 = vmatprep.mubr.msk.f32.mxu1 %vm162_vm0, %v155_v6  ;;  %v151_v13 = vld [vmem:[%s142_s27 + $0x30] sm:$0xff]  ;;  %v152_v15 = vld [vmem:[%s142_s27 + $0x38] sm:$0xff] }
  0x1d   : > { %v159_v14 = vld [vmem:[%s142_s27 + $0x70] sm:$0xff]  ;;  %v160_v16 = vld [vmem:[%s142_s27 + $0x78] sm:$0xff] }
  0x1e   : > { %643 = vmatmul.mubr.msk.f32.gmra.mrb[2].mxu0 %vm162_vm0, %v148_v7 }
  0x1f   : > { %655 = vmatmul.mubr.msk.f32.gmra.mrb[2].mxu1 %vm162_vm0, %v156_v8  ;;  %645 = vmatprep.mubr.msk.f32.mxu0 %vm162_vm0, %v149_v9 }
  0x20   : > { %657 = vmatprep.mubr.msk.f32.mxu1 %vm162_vm0, %v157_v10 }
  0x22   : > { %646 = vmatmul.mubr.msk.f32.gmra.mrb[4].mxu0 %vm162_vm0, %v150_v11 }
  0x23   : > { %658 = vmatmul.mubr.msk.f32.gmra.mrb[4].mxu1 %vm162_vm0, %v158_v12  ;;  %648 = vmatprep.mubr.msk.f32.mxu0 %vm162_vm0, %v151_v13 }
  0x24   : > { %660 = vmatprep.mubr.msk.f32.mxu1 %vm162_vm0, %v159_v14 }
  0x26   : > { %649 = vmatmul.mubr.msk.f32.gmra.mrb[6].mxu0 %vm162_vm0, %v152_v15 }
  0x27   : > { %661 = vmatmul.mubr.msk.f32.gmra.mrb[6].mxu1 %vm162_vm0, %v160_v16 }
  0xed   : > { %v641_v17 = vpop.f32.mrb[0].mxu0 }
  0xee   : > { %v653_v18 = vpop.f32.mrb[0].mxu1  ;;  %v277_v19 = vpop.f32.mrb[1].mxu0 }
  0xef   : > { %v317_v20 = vpop.f32.mrb[1].mxu1  ;;  %v576_v21 = vpack.c.bf16 %v641_v17, %v277_v19 }
  0xf0   : > { %v596_v22 = vpack.c.bf16 %v653_v18, %v317_v20 }
  0xf1   : > { %577 = vst [vmem:[%s137_s30] sm:$0xff] %v576_v21   ;;  %v644_v23 = vpop.f32.mrb[2].mxu0 }
  0xf2   : > { %616 = vst [vmem:[%s137_s30 + $0x20] sm:$0xff] %v596_v22   ;;  %v656_v24 = vpop.f32.mrb[2].mxu1  ;;  %v287_v25 = vpop.f32.mrb[3].mxu0 }
  0xf3   : > { %v327_v26 = vpop.f32.mrb[3].mxu1  ;;  %v581_v27 = vpack.c.bf16 %v644_v23, %v287_v25 }
  0xf4   : > { %v601_v28 = vpack.c.bf16 %v656_v24, %v327_v26 }
  0xf5   : > { %613 = vst [vmem:[%s137_s30 + $0x8] sm:$0xff] %v581_v27   ;;  %v647_v29 = vpop.f32.mrb[4].mxu0 }
  0xf6   : > { %617 = vst [vmem:[%s137_s30 + $0x28] sm:$0xff] %v601_v28   ;;  %v659_v30 = vpop.f32.mrb[4].mxu1  ;;  %v297_v31 = vpop.f32.mrb[5].mxu0 }
  0xf7   : > { %v337_v32 = vpop.f32.mrb[5].mxu1  ;;  %v586_v33 = vpack.c.bf16 %v647_v29, %v297_v31 }
  0xf8   : > { %v606_v34 = vpack.c.bf16 %v659_v30, %v337_v32 }
  0xf9   : > { %614 = vst [vmem:[%s137_s30 + $0x10] sm:$0xff] %v586_v33   ;;  %v650_v35 = vpop.f32.mrb[6].mxu0 }
  0xfa   : > { %618 = vst [vmem:[%s137_s30 + $0x30] sm:$0xff] %v606_v34   ;;  %v662_v36 = vpop.f32.mrb[6].mxu1  ;;  %v307_v37 = vpop.f32.mrb[7].mxu0 }
  0xfb   : > { %v347_v38 = vpop.f32.mrb[7].mxu1  ;;  %v591_v39 = vpack.c.bf16 %v650_v35, %v307_v37 }
  0xfc   : > { %v611_v40 = vpack.c.bf16 %v662_v36, %v347_v38 }
  0xfd   : > { %615 = vst [vmem:[%s137_s30 + $0x18] sm:$0xff] %v591_v39  }
  0xfe   : > { %619 = vst [vmem:[%s137_s30 + $0x38] sm:$0xff] %v611_v40  }
  0xff   : > { %719 = shalt.err (!%p716_p3)
}
 0x100   : > { %s720_s21 = scalar_lea.hbm %s866_s7, 1024  ;;  %s724_s24 = scalar_lea.hbm %s915_s2, 2048 }
 0x101   : > { %p721_p4 = scmp.ne.s32.totalorder %s866_s7, %s720_s21  ;;  %p725_p9 = scmp.lt.u32.totalorder %s866_s7, %s915_s2 }
 0x102   : > { %p726_p10 = scmp.lt.u32.totalorder %s724_s24, %s720_s21  ;;  %p728_p12 = scmp.lt.u32.totalorder %s720_s21, %s866_s7 }
 0x103   : > { %p722_p7 = pnand %p721_p4, %p826_p5 }
 0x104   : > { %p727_p11 = por %p726_p10, %p725_p9 }
 0x105   : > { %p723_p8 = pneg %p722_p7 }
 0x106   : > { %p729_p13 = por %p728_p12, %p727_p11 }
 0x108   : > { %p730_p0 = pnand %p729_p13, %p723_p8 }
 0x10a   : > { %733 = shalt.err (!%p730_p0)
}
 0x10b   : > { %s771_s27 = smov 64   ;;  %s772_s28 = smov 4  }
 0x10c   : > { %665 = dma.vmem_to_hbm [thread:$0]  (%p826_p5), %s868_s4, 1024, %s866_s7, %s872_s8, %s771_s27, %s771_s27, %s772_s28  }
 0x10d PF: > { %p671_p1 = scmp.ge.s32.totalorder %s768_s12, 2  ;;  %s465_s29 = sand.u32 1, %s756_s9  }
 0x10e   : > { %s466_s30 = scalar_lea.sflag [#allocation3], %s465_s29 }
 0x10f   : > { %p668_p2 = pnand %p671_p1, %p830_p6 }
 0x111   : > { %751 = dma.done.wait (!%p668_p2), %s466_s30, 1024  }
 0x112   : > { %753 = vsyncadd (!%p668_p2), %s466_s30, 4294966272  ;;  %p12_p3 = scmp.ge.s32.totalorder %s813_s15, 4   ;;  %s918_s9 = smov %s760_s10 }
 0x113   : > { %s919_s10 = smov %s764_s11  ;;  %s920_s11 = smov %s824_s18 }
 0x114   : > { %s921_s12 = smov %s813_s15  ;;  %14 = sbr.rel (!%p12_p3) target bundleno = 3 (0x3), region = 63 }
 0x11b   :  { %471 = vsyncpa [#allocation3], 1 }
 0x11c   :  { %473 = vsyncpa [#allocation3 + $0x1], 1 }

</bundles_post_ra>
